<compile_context>
chip_gen: v7x
topology: tpu7x:2x2x1
jax: 0.10.0
libtpu: 0.0.40
codegen_flags: <defaults>
</compile_context>

<pallas_src>
import jax
import jax.numpy as jnp
from jax import lax
from jax.experimental import pallas as pl
from jax.experimental.pallas import tpu as pltpu


def _make_policy_value_kernel(tile_n, sub, npop, h):
    """Builds the kernel for one row-tile of TILE_N observations.

    Refs:
      pop_ref: (1, 1, TILE_N) int32  population id per row (lane-dense)
      x_ref:   (TILE_N, H)    f32    observation / hidden state rows
      wt_ref:  (H, NPOP)      f32    stacked value-head weights, pre-transposed
      b_ref:   (1, NPOP)      f32    stacked value-head biases
      val_ref: (1, 1, TILE_N) f32    per-row value estimate (lane-dense)
    """
    nsub = tile_n // sub

    def kernel(pop_ref, x_ref, wt_ref, b_ref, val_ref):
        wt = wt_ref[...]                      # (H, NPOP)
        b = b_ref[...]                        # (1, NPOP)

        for s in range(nsub):                 # small static unroll (<= 4)
            lo = s * sub
            x_s = x_ref[lo:lo + sub, :]                               # (sub, H)
            pop_s = pop_ref[:, :, lo:lo + sub].reshape(1, sub)        # (1, sub)

            # Value head of every population at once (MXU, NN matmul): (sub, NPOP)
            av = jnp.dot(x_s, wt, preferred_element_type=jnp.float32) + b

            # Transposed one-hot built directly in lane orientation: (NPOP, sub)
            rows = lax.broadcasted_iota(jnp.int32, (npop, sub), 0)
            oh_t = (rows == pop_s).astype(jnp.float32)

            # P[i, k] = value of row i under population pop[k].  The diagonal
            # P[k, k] is the desired per-row value; extracting it with an
            # identity mask + axis-0 (sublane) sum yields a (1, sub) row that is
            # already lane-dense — no transpose/relayout needed.
            p = jnp.dot(av, oh_t, preferred_element_type=jnp.float32)  # (sub, sub)
            eye = (lax.broadcasted_iota(jnp.int32, (sub, sub), 0)
                   == lax.broadcasted_iota(jnp.int32, (sub, sub), 1))
            vals = jnp.sum(jnp.where(eye, p, 0.0), axis=0, keepdims=True)  # (1, sub)

            val_ref[:, :, lo:lo + sub] = vals.reshape(1, 1, sub)

    return kernel


def policy_forward(state, pop_ids, weights, biases):
    """Population-specific hidden network and value function.

    Args:
      state:   (N, H) f32 observation/hidden tensor
      pop_ids: (N,)  int32 population id per observation (key[0])
      weights: (NPOP, H) f32 value-head weights (one nn.Linear(H, 1) per pop)
      biases:  (NPOP,)  f32 value-head biases
    Returns:
      hidden (N, H)  — identical to `state` (Hidden.forward is identity on x)
      values (N, 1)  — per-row value estimate from that row's population head
    Note: out-of-range pop ids yield 0.0 (the one-hot selects nothing), whereas
    torch indexing would error — acceptable divergence for invalid ids.
    """
    n, h = state.shape
    npop = weights.shape[0]
    if n == 0:
        # Policy.forward: `if packet.obs.n == 0: return`
        return jnp.zeros((0, h), jnp.float32), jnp.zeros((0, 1), jnp.float32)

    state = state.astype(jnp.float32)
    wt = weights.astype(jnp.float32).T            # (H, NPOP), one-time tiny transpose
    b2d = biases.astype(jnp.float32).reshape(1, npop)

    # Row-tile: large enough to pipeline HBM<->VMEM DMAs well (multiple of 128
    # -> lane-dense value stores), clamped for small N.  512 rows x 32 f32 is
    # 64 KiB per x block — tiny vs every generation's VMEM (incl. v7x's 64 MiB).
    if n >= 512:
        tile_n = 512
    elif n >= 128:
        tile_n = 128
    else:
        tile_n = n
    sub = min(128, tile_n)
    g = -(-n // tile_n)
    n_pad = g * tile_n

    pop = jnp.pad(pop_ids.astype(jnp.int32), (0, n_pad - n))
    pop3d = pop.reshape(g, 1, tile_n)

    kernel = _make_policy_value_kernel(tile_n, sub, npop, h)

    bytes_accessed = n * h * 4 + n_pad * 4 * 2 + (h * npop + npop) * 4
    flops = 2 * n_pad * npop * (h + sub)

    vals3d = pl.pallas_call(
        kernel,
        grid=(g,),
        in_specs=[
            pl.BlockSpec((1, 1, tile_n), lambda i: (i, 0, 0)),   # pop ids (lane-dense)
            pl.BlockSpec((tile_n, h), lambda i: (i, 0)),         # state rows
            pl.BlockSpec((h, npop), lambda i: (0, 0)),           # weights (resident)
            pl.BlockSpec((1, npop), lambda i: (0, 0)),           # biases  (resident)
        ],
        out_specs=pl.BlockSpec((1, 1, tile_n), lambda i: (i, 0, 0)),
        out_shape=jax.ShapeDtypeStruct((g, 1, tile_n), jnp.float32),
        compiler_params=pltpu.CompilerParams(
            dimension_semantics=("parallel",),      # shard row tiles across TCs (v7x)
            vmem_limit_bytes=32 * 1024 * 1024,
        ),
        cost_estimate=pl.CostEstimate(
            flops=flops, transcendentals=0, bytes_accessed=bytes_accessed),
    )(pop3d, state, wt, b2d)

    values = vals3d.reshape(-1)[:n].reshape(n, 1)
    hidden = state   # Hidden.forward returns its input unchanged; no kernel writeback.
    return hidden, values


def _reference(state, pop_ids, weights, biases):
    # Pure-JAX reference mimicking the PyTorch group-by loop.
    vals = state @ weights.T + biases[None, :]            # (N, NPOP)
    v = jnp.take_along_axis(vals, pop_ids[:, None].astype(jnp.int32), axis=1)
    return state, v


if __name__ == "__main__":
    key = jax.random.PRNGKey(0)

    # Small shapes consistent with the module: N observations, HIDDEN=32, NPOP=4.
    N, HIDDEN, NPOP = 8, 32, 4
    k_state, k_w, k_b, k_pop, key = jax.random.split(key, 5)
    state = jax.random.normal(k_state, (N, HIDDEN), dtype=jnp.float32)
    weights = jax.random.normal(k_w, (NPOP, HIDDEN), dtype=jnp.float32) * 0.1
    biases = jax.random.normal(k_b, (NPOP,), dtype=jnp.float32) * 0.1
    pop_ids = jax.random.randint(k_pop, (N,), 0, NPOP, dtype=jnp.int32)

    hidden, values = policy_forward(state, pop_ids, weights, biases)
    jax.block_until_ready((hidden, values))
    ref_h, ref_v = _reference(state, pop_ids, weights, biases)
    assert hidden.shape == (N, HIDDEN) and values.shape == (N, 1)
    assert jnp.allclose(hidden, ref_h, atol=1e-5)
    assert jnp.allclose(values, ref_v, atol=1e-5)

    # Gridded + ragged case: N not a multiple of the 128-row tile.
    N2 = 200
    k_state2, k_pop2, key = jax.random.split(key, 3)
    state2 = jax.random.normal(k_state2, (N2, HIDDEN), dtype=jnp.float32)
    pop2 = jax.random.randint(k_pop2, (N2,), 0, NPOP, dtype=jnp.int32)
    h2, v2 = policy_forward(state2, pop2, weights, biases)
    jax.block_until_ready((h2, v2))
    _, ref_v2 = _reference(state2, pop2, weights, biases)
    assert h2.shape == (N2, HIDDEN) and v2.shape == (N2, 1)
    assert jnp.allclose(v2, ref_v2, atol=1e-5)

    print("KERNEL_OK")
</pallas_src>

<mosaic_0001>
module attributes {stable_mosaic.version = 11 : i64} {
  func.func @kernel(%arg0: i32, %arg1: memref<1x1x8xi32, #tpu.memory_space<vmem>>, %arg2: memref<8x32xf32, #tpu.memory_space<vmem>>, %arg3: memref<32x4xf32, #tpu.memory_space<vmem>>, %arg4: memref<1x4xf32, #tpu.memory_space<vmem>>, %arg5: memref<1x1x8xf32, #tpu.memory_space<vmem>>) attributes {dimension_semantics = [#tpu.dimension_semantics<parallel>], iteration_bounds = array<i64: 1>, scalar_prefetch = 0 : i64, scratch_operands = 0 : i64, tpu.core_type = #tpu.core_type<tc>, window_params = [{transform_indices = @transform_0, window_bounds = array<i64: 1, 1, 8>}, {transform_indices = @transform_1, window_bounds = array<i64: 8, 32>}, {pipeline_mode = #tpu.pipeline_mode<synchronous>, transform_indices = @transform_2, window_bounds = array<i64: 32, 4>}, {pipeline_mode = #tpu.pipeline_mode<synchronous>, transform_indices = @transform_3, window_bounds = array<i64: 1, 4>}, {transform_indices = @transform_4, window_bounds = array<i64: 1, 1, 8>}]} {
    %c0 = arith.constant 0 : index
    %c0_0 = arith.constant 0 : index
    %0 = vector.load %arg3[%c0, %c0_0] : memref<32x4xf32, #tpu.memory_space<vmem>>, vector<32x4xf32>
    %c0_1 = arith.constant 0 : index
    %c0_2 = arith.constant 0 : index
    %1 = vector.load %arg4[%c0_1, %c0_2] : memref<1x4xf32, #tpu.memory_space<vmem>>, vector<1x4xf32>
    %c0_3 = arith.constant 0 : index
    %c0_4 = arith.constant 0 : index
    %2 = vector.load %arg2[%c0_3, %c0_4] : memref<8x32xf32, #tpu.memory_space<vmem>>, vector<8x32xf32>
    %c0_5 = arith.constant 0 : index
    %c0_6 = arith.constant 0 : index
    %c0_7 = arith.constant 0 : index
    %3 = vector.load %arg1[%c0_5, %c0_6, %c0_7] : memref<1x1x8xi32, #tpu.memory_space<vmem>>, vector<1x1x8xi32>
    %4 = vector.shape_cast %3 : vector<1x1x8xi32> to vector<1x8xi32>
    %cst = arith.constant dense<0.000000e+00> : vector<8x4xf32>
    %5 = tpu.matmul %2, %0, %cst {dimension_numbers = #tpu.dot_dimension_numbers<[1], [0], [0], [1], [0, 0, 1, 1], [], []>} : vector<8x32xf32>, vector<32x4xf32>, vector<8x4xf32> -> vector<8x4xf32>
    %6 = vector.broadcast %1 : vector<1x4xf32> to vector<8x4xf32>
    %7 = arith.addf %5, %6 : vector<8x4xf32>
    %8 = tpu.iota {dimensions = array<i32: 0>} : vector<4x8xi32>
    %9 = vector.broadcast %4 : vector<1x8xi32> to vector<4x8xi32>
    %10 = arith.cmpi eq, %8, %9 : vector<4x8xi32>
    %11 = arith.extui %10 : vector<4x8xi1> to vector<4x8xi32>
    %12 = arith.sitofp %11 : vector<4x8xi32> to vector<4x8xf32>
    %cst_8 = arith.constant dense<0.000000e+00> : vector<8x8xf32>
    %13 = tpu.matmul %7, %12, %cst_8 {dimension_numbers = #tpu.dot_dimension_numbers<[1], [0], [0], [1], [0, 0, 1, 1], [], []>} : vector<8x4xf32>, vector<4x8xf32>, vector<8x8xf32> -> vector<8x8xf32>
    %14 = tpu.iota {dimensions = array<i32: 0>} : vector<8x8xi32>
    %15 = tpu.iota {dimensions = array<i32: 1>} : vector<8x8xi32>
    %16 = arith.cmpi eq, %14, %15 : vector<8x8xi32>
    %cst_9 = arith.constant 0.000000e+00 : f32
    %17 = vector.broadcast %cst_9 : f32 to vector<8x8xf32>
    %18 = arith.select %16, %13, %17 : vector<8x8xi1>, vector<8x8xf32>
    %cst_10 = arith.constant dense<0.000000e+00> : vector<8xf32>
    %19 = vector.multi_reduction <add>, %18, %cst_10 [0] : vector<8x8xf32> to vector<8xf32>
    %20 = vector.shape_cast %19 : vector<8xf32> to vector<1x8xf32>
    %21 = vector.shape_cast %20 : vector<1x8xf32> to vector<1x1x8xf32>
    %c0_11 = arith.constant 0 : index
    %c0_12 = arith.constant 0 : index
    %c0_13 = arith.constant 0 : index
    %22 = vector.load %arg5[%c0_11, %c0_12, %c0_13] : memref<1x1x8xf32, #tpu.memory_space<vmem>>, vector<1x1x8xf32>
    tpu.vector_store %arg5[%c0_11, %c0_12, %c0_13], %21 {strides = array<i32>} : memref<1x1x8xf32, #tpu.memory_space<vmem>>, vector<1x1x8xf32>,
    return
  }
  func.func @transform_0(%arg0: i32) -> (i32, i32, i32) {
    %c0_i32 = arith.constant 0 : i32
    %c0_i32_0 = arith.constant 0 : i32
    %c0_i32_1 = arith.constant 0 : i32
    return %arg0, %c0_i32, %c0_i32_0 : i32, i32, i32
  }
  func.func @transform_1(%arg0: i32) -> (i32, i32) {
    %c0_i32 = arith.constant 0 : i32
    %c0_i32_0 = arith.constant 0 : i32
    return %arg0, %c0_i32 : i32, i32
  }
  func.func @transform_2(%arg0: i32) -> (i32, i32) {
    %c0_i32 = arith.constant 0 : i32
    %c0_i32_0 = arith.constant 0 : i32
    %c0_i32_1 = arith.constant 0 : i32
    return %c0_i32, %c0_i32_0 : i32, i32
  }
  func.func @transform_3(%arg0: i32) -> (i32, i32) {
    %c0_i32 = arith.constant 0 : i32
    %c0_i32_0 = arith.constant 0 : i32
    %c0_i32_1 = arith.constant 0 : i32
    return %c0_i32, %c0_i32_0 : i32, i32
  }
  func.func @transform_4(%arg0: i32) -> (i32, i32, i32) {
    %c0_i32 = arith.constant 0 : i32
    %c0_i32_0 = arith.constant 0 : i32
    %c0_i32_1 = arith.constant 0 : i32
    return %arg0, %c0_i32, %c0_i32_0 : i32, i32, i32
  }
}

</mosaic_0001>

<bundles_post_ra>
// kernel: tpu_custom_call.1
= control target key start
LH: loop header
LB: loop body
LE: loop exit
PB: predicated region body
PF: predicated region fallthrough
CT: control target
= control target key end

     0   :  { %v283_v3 = vmov 0.0|0.0   ;;  %vm284_vm0 = vmmov 0   ;;  %v285_v6 = vmov 0.0   ;;  %s345_s0 = inlined_call_operand.vmem [shape: s32[1,1,8], index: 0, kind: input, shape index: {}]   ;;  %s346_s1 = inlined_call_operand.vmem [shape: f32[8,32], index: 1, kind: input, shape index: {}]   ;;  %s347_s2 = inlined_call_operand.vmem [shape: f32[32,4], index: 2, kind: input, shape index: {}]   ;;  %s348_s3 = inlined_call_operand.vmem [shape: f32[1,4], index: 3, kind: input, shape index: {}]   ;;  %s349_s4 = inlined_call_operand.hbm [shape: f32[1,1,8], index: 4, kind: output, shape index: {}]  }
   0x1   :  { %v18_v0 = vld [vmem:[%s347_s2] sm:$0xff]  ;;  %v19_v1 = vld [vmem:[%s347_s2 + $0x8] sm:$0xff]  ;;  %v20_v2 = vld [vmem:[%s347_s2 + $0x10] sm:$0xff]  ;;  %249 = vmatprep.subr.bf16.mxu0 %v283_v3  ;;  %241 = vmatprep.mubr.msk.f32.mxu0 %vm284_vm0, %v285_v6 }
   0x2   :  { %v250_v4 = vpack.c.bf16 %v19_v1, %v18_v0  ;;  %v21_v5 = vld [vmem:[%s347_s2 + $0x18] sm:$0xff]  ;;  %244 = vmatprep.subr.mxu1 %v285_v6  ;;  %246 = vmatprep.mubr.msk.f32.mxu1 %vm284_vm0, %v285_v6 }
   0x3   :  { %9 = vsyncpa [#allocation3], 0  ;;  %v253_v7 = vpack.c.bf16 %v21_v5, %v20_v2  ;;  %v23_v8 = vld [vmem:[%s346_s1] sm:$0xff]  ;;  %vm31_vm1 = vcmask 261120   ;;  %v105_v9 = vlaneseq  ;;  %vm118_vm3 = vcmask 1043456  }
   0x4   :  { %251 = vmatpush3.bf16.msra.mxu0 %v250_v4  ;;  %v222_v11 = vld [vmem:[%s345_s0] ss:$0 sm:$0xff]  ;;  %vm114_vm4 = vcmask 31744   ;;  %vm196_vm6 = vcmask 64512   ;;  %s286_s0 = smov [#allocation2]   ;;  %vm204_vm7 = vcmask 57344  }
   0x5   :  { %252 = vmatprep.subr.bf16.mxu0 %v283_v3  ;;  %v106_v10 = vshrl.u32 %v105_v9, 7  ;;  %v220_v13 = vld [vmem:[%s348_s3] ss:$0 sm:$0xff]  ;;  %v193_v17 = vand.u32 127, %v105_v9  ;;  %s212_s1 = sshll.u32 %s286_s0, 4  ;;  %s213_s1 = int_to_ptr.vmem [resolvable:$true] %s212_s1 }
   0x6   :  { %s259_s3 = scalar_lea.vmem %s213_s1, 16  ;;  %s263_s28 = scalar_lea.vmem %s213_s1, 32 }
   0x7   :  { %vm111_vm2 = vcmp.eq.s32.totalorder %v106_v10, %v222_v11  ;;  %vm194_vm5 = vcmp.eq.s32.totalorder %v106_v10, %v193_v17  ;;  %p260_p0 = scmp.ne.s32.totalorder %s213_s1, %s259_s3  ;;  %p264_p1 = scmp.lt.s32.totalorder %s213_s1, %s213_s1 }
   0x8   :  { %254 = vmatpush3.bf16.msra.mxu0 %v253_v7  ;;  %v223_v12 = vsel %vm111_vm2, 1.0, %v285_v6  ;;  %p265_p2 = scmp.lt.s32.totalorder %s263_s28, %s259_s3 }
   0x9   :  { %245 = vmatpush3.msk.msra.mxu1 %vm118_vm3, %v223_v12 }
   0xa   :  { %p266_p3 = por %p265_p2, %p264_p1 }
   0xb   :  { %242 = vmatmul.mubr.msk.f32.vlgmr.msra.gmra.mrb[0].mxu0 %vm31_vm1, %v23_v8 }
   0xc   :  { %p267_p4 = pnand %p266_p3, %p260_p0 }
  0xde   :  { %v101_v14 = vpop.f32.mrb[0].mxu0 }
  0xdf   :  { %v102_v15 = vadd.f32 %v220_v13, %v101_v14  ;;  %v243_v16 = vpop.f32.mrb[1].mxu0 }
  0xe1   :  { %247 = vmatmul.mubr.msk.f32.vlgmr.msra.gmra.mrb[0].mxu1 %vm114_vm4, %v102_v15 }
 0x1b4   :  { %v188_v18 = vpop.f32.mrb[0].mxu1 }
 0x1b5   :  { %v195_v19 = vsel %vm194_vm5, %v188_v18, 0.0  ;;  %v248_v20 = vpop.f32.mrb[1].mxu1 }
 0x1b6   :  { %v197_v21 = vsel %vm196_vm6, %v195_v19, 0.0 }
 0x1b7   :  { %v198_v22 = vrot.slane %v197_v21, 4 }
 0x1b9   :  { %v199_v23 = vadd.f32 %v198_v22, %v197_v21 }
 0x1bb   :  { %v200_v24 = vrot.slane %v199_v23, 2 }
 0x1bd   :  { %v201_v25 = vadd.f32 %v200_v24, %v199_v23 }
 0x1bf   :  { %v202_v26 = vrot.slane %v201_v25, 1 }
 0x1c1   :  { %v203_v27 = vadd.f32 %v202_v26, %v201_v25 }
 0x1c3   :  { %205 = vst.msk [vmem:[#allocation2] sm:$0x1] %vm204_vm7, %v203_v27 }
 0x1c4   :  { %270 = shalt.err (!%p267_p4)
}
 0x1c5   :  { %s271_s5 = scalar_lea.hbm %s349_s4, 16 }
 0x1c6   :  { %p272_p5 = scmp.ne.s32.totalorder %s349_s4, %s271_s5  ;;  %p275_p6 = scmp.lt.u32.totalorder %s271_s5, %s349_s4 }
 0x1c8   :  { %p277_p7 = pnand %p275_p6, %p272_p5 }
 0x1ca   :  { %280 = shalt.err (!%p277_p7)
}
 0x1cb   :  { %215 = dma.vmem_to_hbm [thread:$0]  %s213_s1, 16, %s349_s4, [#allocation3]  }
 0x1cc   :  { %281 = dma.done.wait [#allocation3], 16  }
 0x1cd   :  { %282 = vsyncadd [#allocation3], 4294967280 }
 0x1ce   :  { %219 = vsyncpa [#allocation3], 1 }

</bundles_post_ra>
